<compile_context>
chip_gen: v7x
topology: tpu7x:2x2x1
jax: 0.10.0
libtpu: 0.0.40
codegen_flags: <defaults>
</compile_context>

<pallas_src>
import functools

import jax
import jax.numpy as jnp
from jax import lax
from jax.experimental import pallas as pl
from jax.experimental.pallas import tpu as pltpu

LANE = 128
SUBLANE = 8


def _round_up(n: int, m: int) -> int:
    return ((n + m - 1) // m) * m


def _pad2(a, rows: int, cols: int):
    return jnp.pad(a, ((0, rows - a.shape[0]), (0, cols - a.shape[1])))


def make_pmlp_kernel(num_syn: int, T: int, beta: float, use_mse: bool):
    """Builds a Pallas kernel closed over the (static) depth, T, beta, criterion flag."""
    L = num_syn

    def kernel(*refs):
        # refs layout (all VMEM tiles, lane-padded to 128):
        #   [0]              x tile           [TB, in0_p]
        #   [1]              y one-hot tile   [TB, nc_p]
        #   [2     .. 2+L)   W_k^T            [in_k_p, out_k_p]   (pre-transposed)
        #   [2+L   .. 2+2L)  W_k              [out_k_p, in_k_p]
        #   [2+2L  .. 2+3L)  b_k              [1, out_k_p]
        #   [2+3L  .. 2+4L)  initial neurons  [TB, out_k_p]
        #   [2+4L  .. 2+5L)  output neurons   (refs to write)
        x = refs[0][...]
        y1h = refs[1][...]
        wts = [refs[2 + k][...] for k in range(L)]        # W^T -> plain [M,K]x[K,N] matmul
        ws = [refs[2 + L + k][...] for k in range(L)]     # W    -> feedback drive
        bs = [refs[2 + 2 * L + k][...] for k in range(L)]
        neurons = [refs[2 + 3 * L + k][...] for k in range(L)]
        outs = refs[2 + 4 * L:]

        tb = x.shape[0]
        # Hoist bias broadcasts out of the unrolled T loop (JAX does not CSE broadcast_in_dim).
        bs_b = [jnp.broadcast_to(bs[k], (tb, bs[k].shape[1])) for k in range(L)]

        # T is small & static -> fully unrolled straight-line code; the independent
        # MXU pushes within one relaxation step stay adjacent so the scheduler can
        # overlap them (only the tanh creates a true dependency across steps).
        for _ in range(T):
            layers = [x] + neurons
            grads = []
            for k in range(L):
                # forward drive: layers[k] @ W_k^T  (pre-transposed -> clean MXU push)
                g = lax.dot_general(
                    layers[k], wts[k], (((1,), (0,)), ((), ())),
                    preferred_element_type=jnp.float32,
                ) + bs_b[k]
                if k + 1 < L:
                    # feedback drive from the layer above: layers[k+2] @ W_{k+1}
                    g = g + lax.dot_general(
                        layers[k + 2], ws[k + 1], (((1,), (0,)), ((), ())),
                        preferred_element_type=jnp.float32,
                    )
                grads.append(g)

            if beta != 0.0:
                # MSE criterion branch of Phi: phi -= beta * 0.5 * ||n_last - y||^2
                grads[-1] = grads[-1] + beta * (y1h - layers[-1])
                # TODO(synk): non-MSE (cross-entropy) criterion branch of Phi not implemented.

            new_neurons = [jnp.tanh(g) for g in grads[:-1]]
            new_neurons.append(jnp.tanh(grads[-1]) if use_mse else grads[-1])
            neurons = new_neurons

        for k in range(L):
            outs[k][...] = neurons[k].astype(outs[k].dtype)

    return kernel


def p_mlp_forward(x, y, weights, biases, neurons0, *, T, beta, nc,
                  use_mse=True, batch_tile=128):
    """JAX wrapper: flatten x, one-hot y, pad to lane width, call the Pallas kernel."""
    B = x.shape[0]
    x_flat = x.reshape(B, -1).astype(jnp.float32)
    y1h = jax.nn.one_hot(y, nc, dtype=jnp.float32)

    L = len(weights)
    in_dims = [int(w.shape[1]) for w in weights]
    out_dims = [int(w.shape[0]) for w in weights]
    in_p = [_round_up(d, LANE) for d in in_dims]
    out_p = [_round_up(d, LANE) for d in out_dims]

    # Batch tiling: one grid axis over batch; weights stay VMEM-resident across tiles.
    TB = batch_tile if B >= batch_tile else _round_up(B, SUBLANE)
    Bp = _round_up(B, TB)
    n_tiles = Bp // TB

    # Zero-padding to lane width is numerically inert: padded weight rows/cols are
    # zero, so padded neuron entries stay exactly 0 through every relaxation step.
    xp = _pad2(x_flat, Bp, in_p[0])
    yp = _pad2(y1h, Bp, out_p[-1])
    ws_p = [_pad2(w.astype(jnp.float32), out_p[k], in_p[k]) for k, w in enumerate(weights)]
    wts_p = [jnp.transpose(w) for w in ws_p]   # pre-transpose ONCE, outside the kernel
    bs_p = [_pad2(b.reshape(1, -1).astype(jnp.float32), 1, out_p[k])
            for k, b in enumerate(biases)]
    ns_p = [_pad2(n.astype(jnp.float32), Bp, out_p[k]) for k, n in enumerate(neurons0)]

    kernel = make_pmlp_kernel(L, T, beta, use_mse)

    def batch_spec(feat):
        return pl.BlockSpec((TB, feat), lambda i: (i, 0))

    def whole_spec(shape):
        return pl.BlockSpec(shape, lambda i: (0, 0))  # same block every tile -> resident

    in_specs = (
        [batch_spec(in_p[0]), batch_spec(out_p[-1])]
        + [whole_spec(w.shape) for w in wts_p]
        + [whole_spec(w.shape) for w in ws_p]
        + [whole_spec(b.shape) for b in bs_p]
        + [batch_spec(out_p[k]) for k in range(L)]
    )
    out_specs = tuple(batch_spec(out_p[k]) for k in range(L))
    out_shape = tuple(jax.ShapeDtypeStruct((Bp, out_p[k]), jnp.float32) for k in range(L))
    inputs = [xp, yp] + wts_p + ws_p + bs_p + ns_p

    # Advisory cost estimate so XLA overlaps the one-hot/reshape/pad ops with kernel DMA.
    flops_tile = 0
    for k in range(L):
        flops_tile += 2 * TB * in_p[k] * out_p[k]
        if k + 1 < L:
            flops_tile += 2 * TB * out_p[k + 1] * out_p[k]
    cost = pl.CostEstimate(
        flops=T * n_tiles * flops_tile,
        transcendentals=T * Bp * sum(out_p),
        bytes_accessed=4 * (sum(int(a.size) for a in inputs) + Bp * sum(out_p)),
    )

    out = pl.pallas_call(
        kernel,
        out_shape=out_shape,
        grid_spec=pltpu.PrefetchScalarGridSpec(
            num_scalar_prefetch=0,
            grid=(n_tiles,),
            in_specs=in_specs,
            out_specs=out_specs,
        ),
        compiler_params=pltpu.CompilerParams(
            # Batch tiles are independent -> shard across TensorCores (v7x megacore).
            dimension_semantics=("parallel",),
        ),
        cost_estimate=cost,
    )(*inputs)

    # Slice the true (unpadded) neuron states back out.
    return [o[:B, :out_dims[k]] for k, o in enumerate(out)]


def p_mlp_forward_ref(x, y, weights, biases, neurons0, *, T, beta, nc, use_mse=True):
    """Pure-JAX reference mirroring the analytical autograd of Phi."""
    x_flat = x.reshape(x.shape[0], -1).astype(jnp.float32)
    y1h = jax.nn.one_hot(y, nc, dtype=jnp.float32)
    neurons = [n.astype(jnp.float32) for n in neurons0]
    L = len(weights)
    for _ in range(T):
        layers = [x_flat] + neurons
        grads = []
        for k in range(L):
            g = layers[k] @ weights[k].T + biases[k]
            if k + 1 < L:
                g = g + layers[k + 2] @ weights[k + 1]
            grads.append(g)
        if beta != 0.0:
            grads[-1] = grads[-1] + beta * (y1h - layers[-1])
        neurons = [jnp.tanh(g) for g in grads[:-1]]
        neurons.append(jnp.tanh(grads[-1]) if use_mse else grads[-1])
    return neurons


def _check(x, y, weights, biases, neurons0, T, beta, nc):
    run = jax.jit(functools.partial(p_mlp_forward, T=T, beta=beta, nc=nc))
    out_neurons = run(x, y, weights, biases, neurons0)
    out_neurons = [jax.block_until_ready(o) for o in out_neurons]
    ref_neurons = p_mlp_forward_ref(x, y, weights, biases, neurons0, T=T, beta=beta, nc=nc)
    for o, r in zip(out_neurons, ref_neurons):
        assert o.shape == r.shape and o.dtype == r.dtype
        assert jnp.allclose(o, r, atol=1e-5, rtol=1e-5)


if __name__ == "__main__":
    # Small synthetic problem: x of shape [batch, channels, feat] -> flattened to 64,
    # architecture [64, 32, 8] (nc = 8 classes), T = 5 relaxation steps, beta = 0.5.
    key = jax.random.PRNGKey(0)
    batch, chan, feat = 8, 4, 16
    archi = [chan * feat, 32, 8]
    T = 5
    beta = 0.5
    nc = archi[-1]

    k_x, k_y, *k_w = jax.random.split(key, 2 + 2 * (len(archi) - 1))
    x = jax.random.normal(k_x, (batch, chan, feat), dtype=jnp.float32)
    y = jax.random.randint(k_y, (batch,), 0, nc, dtype=jnp.int32)

    # Deterministic torch.nn.Linear-style init: U(-1/sqrt(fan_in), 1/sqrt(fan_in)).
    weights, biases = [], []
    for idx in range(len(archi) - 1):
        fan_in, fan_out = archi[idx], archi[idx + 1]
        bound = 1.0 / (fan_in ** 0.5)
        weights.append(jax.random.uniform(k_w[2 * idx], (fan_out, fan_in),
                                          minval=-bound, maxval=bound, dtype=jnp.float32))
        biases.append(jax.random.uniform(k_w[2 * idx + 1], (fan_out,),
                                         minval=-bound, maxval=bound, dtype=jnp.float32))

    # init_neurons: zeros of shape [batch, archi[k+1]]
    neurons0 = [jnp.zeros((batch, s), dtype=jnp.float32) for s in archi[1:]]
    _check(x, y, weights, biases, neurons0, T, beta, nc)

    # Exercise the batch-grid path (2 tiles of 128) as well.
    big_batch = 256
    xb = jax.random.normal(jax.random.PRNGKey(1), (big_batch, chan, feat), dtype=jnp.float32)
    yb = jax.random.randint(jax.random.PRNGKey(2), (big_batch,), 0, nc, dtype=jnp.int32)
    neurons0b = [jnp.zeros((big_batch, s), dtype=jnp.float32) for s in archi[1:]]
    _check(xb, yb, weights, biases, neurons0b, T, beta, nc)

    print("KERNEL_OK")
</pallas_src>

<mosaic_0001>
module attributes {stable_mosaic.version = 11 : i64} {
  func.func @kernel(%arg0: i32, %arg1: memref<8x128xf32, #tpu.memory_space<vmem>>, %arg2: memref<8x128xf32, #tpu.memory_space<vmem>>, %arg3: memref<128x128xf32, #tpu.memory_space<vmem>>, %arg4: memref<128x128xf32, #tpu.memory_space<vmem>>, %arg5: memref<128x128xf32, #tpu.memory_space<vmem>>, %arg6: memref<128x128xf32, #tpu.memory_space<vmem>>, %arg7: memref<1x128xf32, #tpu.memory_space<vmem>>, %arg8: memref<1x128xf32, #tpu.memory_space<vmem>>, %arg9: memref<8x128xf32, #tpu.memory_space<vmem>>, %arg10: memref<8x128xf32, #tpu.memory_space<vmem>>, %arg11: memref<8x128xf32, #tpu.memory_space<vmem>>, %arg12: memref<8x128xf32, #tpu.memory_space<vmem>>) attributes {dimension_semantics = [#tpu.dimension_semantics<parallel>], iteration_bounds = array<i64: 1>, scalar_prefetch = 0 : i64, scratch_operands = 0 : i64, tpu.core_type = #tpu.core_type<tc>, window_params = [{transform_indices = @transform_0, window_bounds = array<i64: 8, 128>}, {transform_indices = @transform_1, window_bounds = array<i64: 8, 128>}, {pipeline_mode = #tpu.pipeline_mode<synchronous>, transform_indices = @transform_2, window_bounds = array<i64: 128, 128>}, {pipeline_mode = #tpu.pipeline_mode<synchronous>, transform_indices = @transform_3, window_bounds = array<i64: 128, 128>}, {pipeline_mode = #tpu.pipeline_mode<synchronous>, transform_indices = @transform_4, window_bounds = array<i64: 128, 128>}, {pipeline_mode = #tpu.pipeline_mode<synchronous>, transform_indices = @transform_5, window_bounds = array<i64: 128, 128>}, {pipeline_mode = #tpu.pipeline_mode<synchronous>, transform_indices = @transform_6, window_bounds = array<i64: 1, 128>}, {pipeline_mode = #tpu.pipeline_mode<synchronous>, transform_indices = @transform_7, window_bounds = array<i64: 1, 128>}, {transform_indices = @transform_8, window_bounds = array<i64: 8, 128>}, {transform_indices = @transform_9, window_bounds = array<i64: 8, 128>}, {transform_indices = @transform_10, window_bounds = array<i64: 8, 128>}, {transform_indices = @transform_11, window_bounds = array<i64: 8, 128>}]} {
    %c0 = arith.constant 0 : index
    %c0_0 = arith.constant 0 : index
    %0 = vector.load %arg1[%c0, %c0_0] : memref<8x128xf32, #tpu.memory_space<vmem>>, vector<8x128xf32>
    %c0_1 = arith.constant 0 : index
    %c0_2 = arith.constant 0 : index
    %1 = vector.load %arg2[%c0_1, %c0_2] : memref<8x128xf32, #tpu.memory_space<vmem>>, vector<8x128xf32>
    %c0_3 = arith.constant 0 : index
    %c0_4 = arith.constant 0 : index
    %2 = vector.load %arg3[%c0_3, %c0_4] : memref<128x128xf32, #tpu.memory_space<vmem>>, vector<128x128xf32>
    %c0_5 = arith.constant 0 : index
    %c0_6 = arith.constant 0 : index
    %3 = vector.load %arg4[%c0_5, %c0_6] : memref<128x128xf32, #tpu.memory_space<vmem>>, vector<128x128xf32>
    %c0_7 = arith.constant 0 : index
    %c0_8 = arith.constant 0 : index
    %4 = vector.load %arg6[%c0_7, %c0_8] : memref<128x128xf32, #tpu.memory_space<vmem>>, vector<128x128xf32>
    %c0_9 = arith.constant 0 : index
    %c0_10 = arith.constant 0 : index
    %5 = vector.load %arg7[%c0_9, %c0_10] : memref<1x128xf32, #tpu.memory_space<vmem>>, vector<1x128xf32>
    %c0_11 = arith.constant 0 : index
    %c0_12 = arith.constant 0 : index
    %6 = vector.load %arg8[%c0_11, %c0_12] : memref<1x128xf32, #tpu.memory_space<vmem>>, vector<1x128xf32>
    %c0_13 = arith.constant 0 : index
    %c0_14 = arith.constant 0 : index
    %7 = vector.load %arg9[%c0_13, %c0_14] : memref<8x128xf32, #tpu.memory_space<vmem>>, vector<8x128xf32>
    %c0_15 = arith.constant 0 : index
    %c0_16 = arith.constant 0 : index
    %8 = vector.load %arg10[%c0_15, %c0_16] : memref<8x128xf32, #tpu.memory_space<vmem>>, vector<8x128xf32>
    %9 = vector.shape_cast %5 : vector<1x128xf32> to vector<1x128xf32>
    %10 = vector.broadcast %9 : vector<1x128xf32> to vector<8x128xf32>
    %11 = vector.shape_cast %6 : vector<1x128xf32> to vector<1x128xf32>
    %12 = vector.broadcast %11 : vector<1x128xf32> to vector<8x128xf32>
    %cst = arith.constant dense<0.000000e+00> : vector<8x128xf32>
    %13 = tpu.matmul %0, %2, %cst {dimension_numbers = #tpu.dot_dimension_numbers<[1], [0], [0], [1], [0, 0, 1, 1], [], []>} : vector<8x128xf32>, vector<128x128xf32>, vector<8x128xf32> -> vector<8x128xf32>
    %14 = arith.addf %13, %10 : vector<8x128xf32>
    %cst_17 = arith.constant dense<0.000000e+00> : vector<8x128xf32>
    %15 = tpu.matmul %8, %4, %cst_17 {dimension_numbers = #tpu.dot_dimension_numbers<[1], [0], [0], [1], [0, 0, 1, 1], [], []>} : vector<8x128xf32>, vector<128x128xf32>, vector<8x128xf32> -> vector<8x128xf32>
    %16 = arith.addf %14, %15 : vector<8x128xf32>
    %cst_18 = arith.constant dense<0.000000e+00> : vector<8x128xf32>
    %17 = tpu.matmul %7, %3, %cst_18 {dimension_numbers = #tpu.dot_dimension_numbers<[1], [0], [0], [1], [0, 0, 1, 1], [], []>} : vector<8x128xf32>, vector<128x128xf32>, vector<8x128xf32> -> vector<8x128xf32>
    %18 = arith.addf %17, %12 : vector<8x128xf32>
    %19 = arith.subf %1, %8 : vector<8x128xf32>
    %cst_19 = arith.constant 5.000000e-01 : f32
    %20 = vector.broadcast %cst_19 : f32 to vector<8x128xf32>
    %21 = arith.mulf %20, %19 : vector<8x128xf32>
    %22 = arith.addf %18, %21 : vector<8x128xf32>
    %23 = math.tanh %16 : vector<8x128xf32>
    %24 = math.tanh %22 : vector<8x128xf32>
    %cst_20 = arith.constant dense<0.000000e+00> : vector<8x128xf32>
    %25 = tpu.matmul %0, %2, %cst_20 {dimension_numbers = #tpu.dot_dimension_numbers<[1], [0], [0], [1], [0, 0, 1, 1], [], []>} : vector<8x128xf32>, vector<128x128xf32>, vector<8x128xf32> -> vector<8x128xf32>
    %26 = arith.addf %25, %10 : vector<8x128xf32>
    %cst_21 = arith.constant dense<0.000000e+00> : vector<8x128xf32>
    %27 = tpu.matmul %24, %4, %cst_21 {dimension_numbers = #tpu.dot_dimension_numbers<[1], [0], [0], [1], [0, 0, 1, 1], [], []>} : vector<8x128xf32>, vector<128x128xf32>, vector<8x128xf32> -> vector<8x128xf32>
    %28 = arith.addf %26, %27 : vector<8x128xf32>
    %cst_22 = arith.constant dense<0.000000e+00> : vector<8x128xf32>
    %29 = tpu.matmul %23, %3, %cst_22 {dimension_numbers = #tpu.dot_dimension_numbers<[1], [0], [0], [1], [0, 0, 1, 1], [], []>} : vector<8x128xf32>, vector<128x128xf32>, vector<8x128xf32> -> vector<8x128xf32>
    %30 = arith.addf %29, %12 : vector<8x128xf32>
    %31 = arith.subf %1, %24 : vector<8x128xf32>
    %cst_23 = arith.constant 5.000000e-01 : f32
    %32 = vector.broadcast %cst_23 : f32 to vector<8x128xf32>
    %33 = arith.mulf %32, %31 : vector<8x128xf32>
    %34 = arith.addf %30, %33 : vector<8x128xf32>
    %35 = math.tanh %28 : vector<8x128xf32>
    %36 = math.tanh %34 : vector<8x128xf32>
    %cst_24 = arith.constant dense<0.000000e+00> : vector<8x128xf32>
    %37 = tpu.matmul %0, %2, %cst_24 {dimension_numbers = #tpu.dot_dimension_numbers<[1], [0], [0], [1], [0, 0, 1, 1], [], []>} : vector<8x128xf32>, vector<128x128xf32>, vector<8x128xf32> -> vector<8x128xf32>
    %38 = arith.addf %37, %10 : vector<8x128xf32>
    %cst_25 = arith.constant dense<0.000000e+00> : vector<8x128xf32>
    %39 = tpu.matmul %36, %4, %cst_25 {dimension_numbers = #tpu.dot_dimension_numbers<[1], [0], [0], [1], [0, 0, 1, 1], [], []>} : vector<8x128xf32>, vector<128x128xf32>, vector<8x128xf32> -> vector<8x128xf32>
    %40 = arith.addf %38, %39 : vector<8x128xf32>
    %cst_26 = arith.constant dense<0.000000e+00> : vector<8x128xf32>
    %41 = tpu.matmul %35, %3, %cst_26 {dimension_numbers = #tpu.dot_dimension_numbers<[1], [0], [0], [1], [0, 0, 1, 1], [], []>} : vector<8x128xf32>, vector<128x128xf32>, vector<8x128xf32> -> vector<8x128xf32>
    %42 = arith.addf %41, %12 : vector<8x128xf32>
    %43 = arith.subf %1, %36 : vector<8x128xf32>
    %cst_27 = arith.constant 5.000000e-01 : f32
    %44 = vector.broadcast %cst_27 : f32 to vector<8x128xf32>
    %45 = arith.mulf %44, %43 : vector<8x128xf32>
    %46 = arith.addf %42, %45 : vector<8x128xf32>
    %47 = math.tanh %40 : vector<8x128xf32>
    %48 = math.tanh %46 : vector<8x128xf32>
    %cst_28 = arith.constant dense<0.000000e+00> : vector<8x128xf32>
    %49 = tpu.matmul %0, %2, %cst_28 {dimension_numbers = #tpu.dot_dimension_numbers<[1], [0], [0], [1], [0, 0, 1, 1], [], []>} : vector<8x128xf32>, vector<128x128xf32>, vector<8x128xf32> -> vector<8x128xf32>
    %50 = arith.addf %49, %10 : vector<8x128xf32>
    %cst_29 = arith.constant dense<0.000000e+00> : vector<8x128xf32>
    %51 = tpu.matmul %48, %4, %cst_29 {dimension_numbers = #tpu.dot_dimension_numbers<[1], [0], [0], [1], [0, 0, 1, 1], [], []>} : vector<8x128xf32>, vector<128x128xf32>, vector<8x128xf32> -> vector<8x128xf32>
    %52 = arith.addf %50, %51 : vector<8x128xf32>
    %cst_30 = arith.constant dense<0.000000e+00> : vector<8x128xf32>
    %53 = tpu.matmul %47, %3, %cst_30 {dimension_numbers = #tpu.dot_dimension_numbers<[1], [0], [0], [1], [0, 0, 1, 1], [], []>} : vector<8x128xf32>, vector<128x128xf32>, vector<8x128xf32> -> vector<8x128xf32>
    %54 = arith.addf %53, %12 : vector<8x128xf32>
    %55 = arith.subf %1, %48 : vector<8x128xf32>
    %cst_31 = arith.constant 5.000000e-01 : f32
    %56 = vector.broadcast %cst_31 : f32 to vector<8x128xf32>
    %57 = arith.mulf %56, %55 : vector<8x128xf32>
    %58 = arith.addf %54, %57 : vector<8x128xf32>
    %59 = math.tanh %52 : vector<8x128xf32>
    %60 = math.tanh %58 : vector<8x128xf32>
    %cst_32 = arith.constant dense<0.000000e+00> : vector<8x128xf32>
    %61 = tpu.matmul %0, %2, %cst_32 {dimension_numbers = #tpu.dot_dimension_numbers<[1], [0], [0], [1], [0, 0, 1, 1], [], []>} : vector<8x128xf32>, vector<128x128xf32>, vector<8x128xf32> -> vector<8x128xf32>
    %62 = arith.addf %61, %10 : vector<8x128xf32>
    %cst_33 = arith.constant dense<0.000000e+00> : vector<8x128xf32>
    %63 = tpu.matmul %60, %4, %cst_33 {dimension_numbers = #tpu.dot_dimension_numbers<[1], [0], [0], [1], [0, 0, 1, 1], [], []>} : vector<8x128xf32>, vector<128x128xf32>, vector<8x128xf32> -> vector<8x128xf32>
    %64 = arith.addf %62, %63 : vector<8x128xf32>
    %cst_34 = arith.constant dense<0.000000e+00> : vector<8x128xf32>
    %65 = tpu.matmul %59, %3, %cst_34 {dimension_numbers = #tpu.dot_dimension_numbers<[1], [0], [0], [1], [0, 0, 1, 1], [], []>} : vector<8x128xf32>, vector<128x128xf32>, vector<8x128xf32> -> vector<8x128xf32>
    %66 = arith.addf %65, %12 : vector<8x128xf32>
    %67 = arith.subf %1, %60 : vector<8x128xf32>
    %cst_35 = arith.constant 5.000000e-01 : f32
    %68 = vector.broadcast %cst_35 : f32 to vector<8x128xf32>
    %69 = arith.mulf %68, %67 : vector<8x128xf32>
    %70 = arith.addf %66, %69 : vector<8x128xf32>
    %71 = math.tanh %64 : vector<8x128xf32>
    %72 = math.tanh %70 : vector<8x128xf32>
    %c0_36 = arith.constant 0 : index
    %c0_37 = arith.constant 0 : index
    %73 = vector.load %arg11[%c0_36, %c0_37] : memref<8x128xf32, #tpu.memory_space<vmem>>, vector<8x128xf32>
    tpu.vector_store %arg11[%c0_36, %c0_37], %71 {strides = array<i32>} : memref<8x128xf32, #tpu.memory_space<vmem>>, vector<8x128xf32>,
    %c0_38 = arith.constant 0 : index
    %c0_39 = arith.constant 0 : index
    %74 = vector.load %arg12[%c0_38, %c0_39] : memref<8x128xf32, #tpu.memory_space<vmem>>, vector<8x128xf32>
    tpu.vector_store %arg12[%c0_38, %c0_39], %72 {strides = array<i32>} : memref<8x128xf32, #tpu.memory_space<vmem>>, vector<8x128xf32>,
    return
  }
  func.func @transform_0(%arg0: i32) -> (i32, i32) {
    %c0_i32 = arith.constant 0 : i32
    %c0_i32_0 = arith.constant 0 : i32
    return %arg0, %c0_i32 : i32, i32
  }
  func.func @transform_1(%arg0: i32) -> (i32, i32) {
    %c0_i32 = arith.constant 0 : i32
    %c0_i32_0 = arith.constant 0 : i32
    return %arg0, %c0_i32 : i32, i32
  }
  func.func @transform_2(%arg0: i32) -> (i32, i32) {
    %c0_i32 = arith.constant 0 : i32
    %c0_i32_0 = arith.constant 0 : i32
    %c0_i32_1 = arith.constant 0 : i32
    return %c0_i32, %c0_i32_0 : i32, i32
  }
  func.func @transform_3(%arg0: i32) -> (i32, i32) {
    %c0_i32 = arith.constant 0 : i32
    %c0_i32_0 = arith.constant 0 : i32
    %c0_i32_1 = arith.constant 0 : i32
    return %c0_i32, %c0_i32_0 : i32, i32
  }
  func.func @transform_4(%arg0: i32) -> (i32, i32) {
    %c0_i32 = arith.constant 0 : i32
    %c0_i32_0 = arith.constant 0 : i32
    %c0_i32_1 = arith.constant 0 : i32
    return %c0_i32, %c0_i32_0 : i32, i32
  }
  func.func @transform_5(%arg0: i32) -> (i32, i32) {
    %c0_i32 = arith.constant 0 : i32
    %c0_i32_0 = arith.constant 0 : i32
    %c0_i32_1 = arith.constant 0 : i32
    return %c0_i32, %c0_i32_0 : i32, i32
  }
  func.func @transform_6(%arg0: i32) -> (i32, i32) {
    %c0_i32 = arith.constant 0 : i32
    %c0_i32_0 = arith.constant 0 : i32
    %c0_i32_1 = arith.constant 0 : i32
    return %c0_i32, %c0_i32_0 : i32, i32
  }
  func.func @transform_7(%arg0: i32) -> (i32, i32) {
    %c0_i32 = arith.constant 0 : i32
    %c0_i32_0 = arith.constant 0 : i32
    %c0_i32_1 = arith.constant 0 : i32
    return %c0_i32, %c0_i32_0 : i32, i32
  }
  func.func @transform_8(%arg0: i32) -> (i32, i32) {
    %c0_i32 = arith.constant 0 : i32
    %c0_i32_0 = arith.constant 0 : i32
    return %arg0, %c0_i32 : i32, i32
  }
  func.func @transform_9(%arg0: i32) -> (i32, i32) {
    %c0_i32 = arith.constant 0 : i32
    %c0_i32_0 = arith.constant 0 : i32
    return %arg0, %c0_i32 : i32, i32
  }
  func.func @transform_10(%arg0: i32) -> (i32, i32) {
    %c0_i32 = arith.constant 0 : i32
    %c0_i32_0 = arith.constant 0 : i32
    return %arg0, %c0_i32 : i32, i32
  }
  func.func @transform_11(%arg0: i32) -> (i32, i32) {
    %c0_i32 = arith.constant 0 : i32
    %c0_i32_0 = arith.constant 0 : i32
    return %arg0, %c0_i32 : i32, i32
  }
}

</mosaic_0001>

<bundles_post_ra>
// kernel: p_mlp_forward.1
= control target key start
LH: loop header
LB: loop body
LE: loop exit
PB: predicated region body
PF: predicated region fallthrough
CT: control target
= control target key end

     0   :  { %17 = vsyncpa [#allocation3], 0  ;;  %v1846_v3 = vmov 0.0|0.0   ;;  %vm1847_vm0 = vmmov 0   ;;  %v1848_v11 = vmov 0.0   ;;  %s2344_s0 = inlined_call_operand.vmem [shape: f32[8,128], index: 0, kind: input, shape index: {}]   ;;  %s2345_s1 = inlined_call_operand.vmem [shape: f32[8,128], index: 1, kind: input, shape index: {}]   ;;  %s2346_s2 = inlined_call_operand.vmem [shape: f32[128,128], index: 2, kind: input, shape index: {}]   ;;  %s2347_s3 = inlined_call_operand.vmem [shape: f32[128,128], index: 3, kind: input, shape index: {}]   ;;  %s2348_s4 = inlined_call_operand.vmem [shape: f32[128,128], index: 4, kind: input, shape index: {}]   ;;  %s2349_s5 = inlined_call_operand.vmem [shape: f32[128,128], index: 5, kind: input, shape index: {}]   ;;  %s2350_s6 = inlined_call_operand.vmem [shape: f32[1,128], index: 6, kind: input, shape index: {}]   ;;  %s2351_s7 = inlined_call_operand.vmem [shape: f32[1,128], index: 7, kind: input, shape index: {}]   ;;  %s2352_s8 = inlined_call_operand.vmem [shape: f32[8,128], index: 8, kind: input, shape index: {}]   ;;  %s2353_s9 = inlined_call_operand.vmem [shape: f32[8,128], index: 9, kind: input, shape index: {}]   ;;  %s2354_s10 = inlined_call_operand.hbm [shape: f32[8,128], index: 10, kind: output, shape index: {0}]   ;;  %s2355_s11 = inlined_call_operand.hbm [shape: f32[8,128], index: 11, kind: output, shape index: {1}]  }
   0x1   :  { %v41_v0 = vld [vmem:[%s2346_s2] sm:$0xff]  ;;  %v42_v1 = vld [vmem:[%s2346_s2 + $0x8] sm:$0xff]  ;;  %1509 = vmatprep.subr.bf16.mxu0 %v1846_v3  ;;  %1533 = vmatprep.subr.bf16.mxu1 %v1846_v3  ;;  %v43_v6 = vld [vmem:[%s2346_s2 + $0x10] sm:$0xff] }
   0x2   :  { %v73_v2 = vld [vmem:[%s2349_s5] sm:$0xff]  ;;  %v1510_v4 = vpack.c.bf16 %v42_v1, %v41_v0  ;;  %v74_v5 = vld [vmem:[%s2349_s5 + $0x8] sm:$0xff]  ;;  %v44_v7 = vld [vmem:[%s2346_s2 + $0x18] sm:$0xff]  ;;  %1156 = vmatprep.mubr.msk.f32.mxu0 %vm1847_vm0, %v1848_v11  ;;  %1191 = vmatprep.mubr.msk.f32.mxu1 %vm1847_vm0, %v1848_v11 }
   0x3   :  { %v1931_v8 = vpack.c.bf16 %v74_v5, %v73_v2  ;;  %v75_v9 = vld [vmem:[%s2349_s5 + $0x10] sm:$0xff]  ;;  %v76_v10 = vld [vmem:[%s2349_s5 + $0x18] sm:$0xff]  ;;  %v1513_v12 = vpack.c.bf16 %v44_v7, %v43_v6  ;;  %v45_v14 = vld [vmem:[%s2346_s2 + $0x20] sm:$0xff] }
   0x4   :  { %1511 = vmatpush3.bf16.msra.mxu0 %v1510_v4  ;;  %v1945_v13 = vpack.c.bf16 %v76_v10, %v75_v9  ;;  %v46_v15 = vld [vmem:[%s2346_s2 + $0x28] sm:$0xff]  ;;  %v77_v16 = vld [vmem:[%s2349_s5 + $0x20] sm:$0xff]  ;;  %v47_v20 = vld [vmem:[%s2346_s2 + $0x30] sm:$0xff] }
   0x5   :  { %1535 = vmatpush3.bf16.msra.mxu1 %v1931_v8  ;;  %1512 = vmatprep.subr.bf16.mxu0 %v1846_v3  ;;  %v78_v17 = vld [vmem:[%s2349_s5 + $0x28] sm:$0xff]  ;;  %v1516_v18 = vpack.c.bf16 %v46_v15, %v45_v14  ;;  %v48_v21 = vld [vmem:[%s2346_s2 + $0x38] sm:$0xff]  ;;  %v79_v22 = vld [vmem:[%s2349_s5 + $0x30] sm:$0xff] }
   0x6   :  { %1536 = vmatprep.subr.bf16.mxu1 %v1846_v3  ;;  %v1962_v19 = vpack.c.bf16 %v78_v17, %v77_v16  ;;  %v80_v23 = vld [vmem:[%s2349_s5 + $0x38] sm:$0xff]  ;;  %v1519_v24 = vpack.c.bf16 %v48_v21, %v47_v20  ;;  %v49_v26 = vld [vmem:[%s2346_s2 + $0x40] sm:$0xff]  ;;  %v50_v27 = vld [vmem:[%s2346_s2 + $0x48] sm:$0xff] }
   0x7   :  { %v1979_v25 = vpack.c.bf16 %v80_v23, %v79_v22  ;;  %v81_v28 = vld [vmem:[%s2349_s5 + $0x40] sm:$0xff]  ;;  %v82_v29 = vld [vmem:[%s2349_s5 + $0x48] sm:$0xff]  ;;  %v1522_v30 = vpack.c.bf16 %v50_v27, %v49_v26  ;;  %v51_v32 = vld [vmem:[%s2346_s2 + $0x50] sm:$0xff] }
   0x8   :  { %1514 = vmatpush3.bf16.msra.mxu0 %v1513_v12  ;;  %v1996_v31 = vpack.c.bf16 %v82_v29, %v81_v28  ;;  %v52_v33 = vld [vmem:[%s2346_s2 + $0x58] sm:$0xff]  ;;  %v83_v34 = vld [vmem:[%s2349_s5 + $0x50] sm:$0xff] }
   0x9   :  { %1538 = vmatpush3.bf16.msra.mxu1 %v1945_v13  ;;  %1515 = vmatprep.subr.bf16.mxu0 %v1846_v3  ;;  %v84_v35 = vld [vmem:[%s2349_s5 + $0x58] sm:$0xff] }
   0xa   :  { %1539 = vmatprep.subr.bf16.mxu1 %v1846_v3 }
   0xc   :  { %1517 = vmatpush3.bf16.msra.mxu0 %v1516_v18 }
   0xd   :  { %1541 = vmatpush3.bf16.msra.mxu1 %v1962_v19  ;;  %1518 = vmatprep.subr.bf16.mxu0 %v1846_v3 }
   0xe   :  { %1542 = vmatprep.subr.bf16.mxu1 %v1846_v3 }
  0x10   :  { %1520 = vmatpush3.bf16.msra.mxu0 %v1519_v24 }
  0x11   :  { %1544 = vmatpush3.bf16.msra.mxu1 %v1979_v25  ;;  %1521 = vmatprep.subr.bf16.mxu0 %v1846_v3 }
  0x12   :  { %1545 = vmatprep.subr.bf16.mxu1 %v1846_v3 }
  0x13   :  { %18 = vsyncpa [#allocation5], 0  ;;  %v1525_v36 = vpack.c.bf16 %v52_v33, %v51_v32  ;;  %v2013_v37 = vpack.c.bf16 %v84_v35, %v83_v34  ;;  %v53_v38 = vld [vmem:[%s2346_s2 + $0x60] sm:$0xff]  ;;  %v54_v39 = vld [vmem:[%s2346_s2 + $0x68] sm:$0xff] }
  0x14   :  { %1523 = vmatpush3.bf16.msra.mxu0 %v1522_v30  ;;  %v85_v40 = vld [vmem:[%s2349_s5 + $0x60] sm:$0xff]  ;;  %v86_v41 = vld [vmem:[%s2349_s5 + $0x68] sm:$0xff]  ;;  %v1528_v42 = vpack.c.bf16 %v54_v39, %v53_v38  ;;  %v55_v44 = vld [vmem:[%s2346_s2 + $0x70] sm:$0xff] }
  0x15   :  { %1547 = vmatpush3.bf16.msra.mxu1 %v1996_v31  ;;  %1524 = vmatprep.subr.bf16.mxu0 %v1846_v3  ;;  %v2030_v43 = vpack.c.bf16 %v86_v41, %v85_v40  ;;  %v56_v45 = vld [vmem:[%s2346_s2 + $0x78] sm:$0xff]  ;;  %v87_v46 = vld [vmem:[%s2349_s5 + $0x70] sm:$0xff]  ;;  %v57_v50 = vld [vmem:[%s2347_s3] sm:$0xff] }
  0x16   :  { %1548 = vmatprep.subr.bf16.mxu1 %v1846_v3  ;;  %v88_v47 = vld [vmem:[%s2349_s5 + $0x78] sm:$0xff]  ;;  %v1531_v48 = vpack.c.bf16 %v56_v45, %v55_v44  ;;  %v58_v51 = vld [vmem:[%s2347_s3 + $0x8] sm:$0xff]  ;;  %v39_v52 = vld [vmem:[%s2344_s0] sm:$0xff] }
  0x17   :  { %v2047_v49 = vpack.c.bf16 %v88_v47, %v87_v46  ;;  %v2059_v53 = vpack.c.bf16 %v58_v51, %v57_v50  ;;  %v2066_v54 = vld [vmem:[%s2353_s9] sm:$0xff]  ;;  %v59_v55 = vld [vmem:[%s2347_s3 + $0x10] sm:$0xff]  ;;  %v60_v56 = vld [vmem:[%s2347_s3 + $0x18] sm:$0xff] }
  0x18   :  { %1526 = vmatpush3.bf16.msra.mxu0 %v1525_v36  ;;  %v2077_v57 = vpack.c.bf16 %v60_v56, %v59_v55  ;;  %v61_v58 = vld [vmem:[%s2347_s3 + $0x20] sm:$0xff]  ;;  %v62_v59 = vld [vmem:[%s2347_s3 + $0x28] sm:$0xff]  ;;  %v63_v61 = vld [vmem:[%s2347_s3 + $0x30] sm:$0xff] }
  0x19   :  { %1550 = vmatpush3.bf16.msra.mxu1 %v2013_v37  ;;  %1527 = vmatprep.subr.bf16.mxu0 %v1846_v3  ;;  %v2093_v60 = vpack.c.bf16 %v62_v59, %v61_v58  ;;  %v64_v62 = vld [vmem:[%s2347_s3 + $0x38] sm:$0xff]  ;;  %v65_v0 = vld [vmem:[%s2347_s3 + $0x40] sm:$0xff]  ;;  %v66_v1 = vld [vmem:[%s2347_s3 + $0x48] sm:$0xff] }
  0x1a   :  { %1551 = vmatprep.subr.bf16.mxu1 %v1846_v3  ;;  %v2105_v63 = vpack.c.bf16 %v64_v62, %v63_v61  ;;  %v2117_v2 = vpack.c.bf16 %v66_v1, %v65_v0  ;;  %v67_v4 = vld [vmem:[%s2347_s3 + $0x50] sm:$0xff]  ;;  %v68_v5 = vld [vmem:[%s2347_s3 + $0x58] sm:$0xff]  ;;  %v69_v7 = vld [vmem:[%s2347_s3 + $0x60] sm:$0xff] }
  0x1b   :  { %v2129_v6 = vpack.c.bf16 %v68_v5, %v67_v4  ;;  %v70_v9 = vld [vmem:[%s2347_s3 + $0x68] sm:$0xff]  ;;  %v71_v12 = vld [vmem:[%s2347_s3 + $0x70] sm:$0xff]  ;;  %v72_v14 = vld [vmem:[%s2347_s3 + $0x78] sm:$0xff] }
  0x1c   :  { %1529 = vmatpush3.bf16.msra.mxu0 %v1528_v42  ;;  %v2141_v10 = vpack.c.bf16 %v70_v9, %v69_v7  ;;  %v2153_v15 = vpack.c.bf16 %v72_v14, %v71_v12  ;;  %v91_v16 = vld [vmem:[%s2352_s8] sm:$0xff] }
  0x1d   :  { %1553 = vmatpush3.bf16.msra.mxu1 %v2030_v43  ;;  %1530 = vmatprep.subr.bf16.mxu0 %v1846_v3  ;;  %v935_v17 = vld [vmem:[%s2350_s6] ss:$0 sm:$0xff] }
  0x1e   :  { %1554 = vmatprep.subr.bf16.mxu1 %v1846_v3  ;;  %v2198_v27 = vld [vmem:[%s2345_s1] sm:$0xff]  ;;  %s1849_s1 = smov [#allocation2]  }
  0x1f   :  { %v316_v28 = vsub.f32 %v2198_v27, %v2066_v54  ;;  %v2208_v29 = vld [vmem:[%s2351_s7] ss:$0 sm:$0xff]  ;;  %s913_s7 = sshll.u32 %s1849_s1, 4  ;;  %s914_s7 = int_to_ptr.vmem [resolvable:$true] %s913_s7 }
  0x20   :  { %1532 = vmatpush3.bf16.msra.mxu0 %v1531_v48  ;;  %s1798_s14 = scalar_lea.vmem %s914_s7, 128  ;;  %p1803_p1 = scmp.lt.s32.totalorder %s914_s7, %s914_s7 }
  0x21   :  { %1556 = vmatpush3.bf16.msra.mxu1 %v2047_v49  ;;  %1557 = vmatprep.subr.bf16.mxu0 %v1846_v3  ;;  %v317_v30 = vmul.f32 0.5, %v316_v28  ;;  %p1799_p0 = scmp.ne.s32.totalorder %s914_s7, %s1798_s14  ;;  %p1804_p2 = scmp.lt.s32.totalorder %s1798_s14, %s1798_s14 }
  0x22   :  { %1581 = vmatprep.subr.bf16.mxu1 %v1846_v3 }
  0x23   :  { %1157 = vmatmul.mubr.f32.vlgmr.msra.gmra.mrb[0].mxu0 %v39_v52  ;;  %p1805_p3 = por %p1804_p2, %p1803_p1 }
  0x24   :  { %1559 = vmatpush3.bf16.msra.mxu0 %v2059_v53  ;;  %1192 = vmatmul.mubr.f32.vlgmr.msra.gmra.mrb[0].mxu1 %v2066_v54 }
  0x25   :  { %1560 = vmatprep.subr.bf16.mxu0 %v1846_v3  ;;  %1226 = vmatprep.mubr.msk.f32.mxu0 %vm1847_vm0, %v1848_v11  ;;  %p1806_p4 = pnand %p1805_p3, %p1799_p0 }
  0x26   :  { %1583 = vmatpush3.bf16.msra.mxu1 %v1931_v8  ;;  %1261 = vmatprep.mubr.msk.f32.mxu1 %vm1847_vm0, %v1848_v11 }
  0x27   :  { %1584 = vmatprep.subr.bf16.mxu1 %v1846_v3 }
  0x28   :  { %1562 = vmatpush3.bf16.msra.mxu0 %v2077_v57 }
  0x29   :  { %1563 = vmatprep.subr.bf16.mxu0 %v1846_v3 }
  0x2a   :  { %1586 = vmatpush3.bf16.msra.mxu1 %v1945_v13 }
  0x2b   :  { %1587 = vmatprep.subr.bf16.mxu1 %v1846_v3 }
  0x2c   :  { %1565 = vmatpush3.bf16.msra.mxu0 %v2093_v60 }
  0x2d   :  { %1566 = vmatprep.subr.bf16.mxu0 %v1846_v3 }
  0x2e   :  { %1589 = vmatpush3.bf16.msra.mxu1 %v1962_v19 }
  0x2f   :  { %1590 = vmatprep.subr.bf16.mxu1 %v1846_v3 }
  0x30   :  { %1568 = vmatpush3.bf16.msra.mxu0 %v2105_v63 }
  0x31   :  { %1569 = vmatprep.subr.bf16.mxu0 %v1846_v3 }
  0x32   :  { %1592 = vmatpush3.bf16.msra.mxu1 %v1979_v25 }
  0x33   :  { %1593 = vmatprep.subr.bf16.mxu1 %v1846_v3 }
  0x34   :  { %1571 = vmatpush3.bf16.msra.mxu0 %v2117_v2 }
  0x35   :  { %1572 = vmatprep.subr.bf16.mxu0 %v1846_v3 }
  0x36   :  { %1595 = vmatpush3.bf16.msra.mxu1 %v1996_v31 }
  0x37   :  { %1596 = vmatprep.subr.bf16.mxu1 %v1846_v3 }
  0x38   :  { %1574 = vmatpush3.bf16.msra.mxu0 %v2129_v6 }
  0x39   :  { %1575 = vmatprep.subr.bf16.mxu0 %v1846_v3 }
  0x3a   :  { %1598 = vmatpush3.bf16.msra.mxu1 %v2013_v37 }
  0x3b   :  { %1599 = vmatprep.subr.bf16.mxu1 %v1846_v3 }
  0x3c   :  { %1577 = vmatpush3.bf16.msra.mxu0 %v2141_v10 }
  0x3d   :  { %1578 = vmatprep.subr.bf16.mxu0 %v1846_v3 }
  0x3e   :  { %1601 = vmatpush3.bf16.msra.mxu1 %v2030_v43 }
  0x3f   :  { %1602 = vmatprep.subr.bf16.mxu1 %v1846_v3 }
  0x40   :  { %1580 = vmatpush3.bf16.msra.mxu0 %v2153_v15 }
  0x41   :  { %1605 = vmatprep.subr.bf16.mxu0 %v1846_v3 }
  0x42   :  { %1604 = vmatpush3.bf16.msra.mxu1 %v2047_v49 }
  0x43   :  { %1227 = vmatmul.mubr.f32.vlgmr.msra.gmra.mrb[2].mxu0 %v91_v16  ;;  %1629 = vmatprep.subr.bf16.mxu1 %v1846_v3 }
  0x44   :  { %1607 = vmatpush3.bf16.msra.mxu0 %v2059_v53  ;;  %1296 = vmatprep.mubr.msk.f32.mxu0 %vm1847_vm0, %v1848_v11 }
  0x45   :  { %1608 = vmatprep.subr.bf16.mxu0 %v1846_v3 }
  0x48   :  { %1610 = vmatpush3.bf16.msra.mxu0 %v2077_v57 }
  0x49   :  { %1611 = vmatprep.subr.bf16.mxu0 %v1846_v3 }
  0x4c   :  { %1613 = vmatpush3.bf16.msra.mxu0 %v2093_v60 }
  0x4d   :  { %1614 = vmatprep.subr.bf16.mxu0 %v1846_v3 }
  0x50   :  { %1616 = vmatpush3.bf16.msra.mxu0 %v2105_v63 }
  0x51   :  { %1617 = vmatprep.subr.bf16.mxu0 %v1846_v3 }
  0x54   :  { %1619 = vmatpush3.bf16.msra.mxu0 %v2117_v2 }
  0x55   :  { %1620 = vmatprep.subr.bf16.mxu0 %v1846_v3 }
  0x58   :  { %1622 = vmatpush3.bf16.msra.mxu0 %v2129_v6 }
  0x59   :  { %1623 = vmatprep.subr.bf16.mxu0 %v1846_v3 }
  0x5c   :  { %1625 = vmatpush3.bf16.msra.mxu0 %v2141_v10 }
  0x5d   :  { %1626 = vmatprep.subr.bf16.mxu0 %v1846_v3 }
  0x60   :  { %1628 = vmatpush3.bf16.msra.mxu0 %v2153_v15 }
  0x61   :  { %1653 = vmatprep.subr.bf16.mxu0 %v1846_v3 }
  0xf6   :  { %v171_v18 = vpop.f32.mrb[0].mxu0 }
  0xf7   :  { %v2186_v20 = vadd.f32 %v935_v17, %v171_v18  ;;  %v1158_v21 = vpop.f32.mrb[1].mxu0  ;;  %v241_v22 = vpop.f32.mrb[0].mxu1 }
  0xf8   :  { %v1193_v23 = vpop.f32.mrb[1].mxu1 }
  0xf9   :  { %v245_v24 = vadd.f32 %v241_v22, %v2186_v20 }
  0xfb   :  { %1778 = vtanh.f32 %v245_v24 }
 0x105   :  { %v1779_v26 = vpop.eup %1778 }
 0x106   :  { %1297 = vmatmul.mubr.f32.vlgmr.msra.gmra.mrb[4].mxu0 %v1779_v26 }
 0x107   :  { %1655 = vmatpush3.bf16.msra.mxu0 %v2059_v53  ;;  %1366 = vmatprep.mubr.msk.f32.mxu0 %vm1847_vm0, %v1848_v11 }
 0x108   :  { %1656 = vmatprep.subr.bf16.mxu0 %v1846_v3 }
 0x10b   :  { %1658 = vmatpush3.bf16.msra.mxu0 %v2077_v57 }
 0x10c   :  { %1659 = vmatprep.subr.bf16.mxu0 %v1846_v3 }
 0x10f   :  { %1661 = vmatpush3.bf16.msra.mxu0 %v2093_v60 }
 0x110   :  { %1662 = vmatprep.subr.bf16.mxu0 %v1846_v3 }
 0x113   :  { %1664 = vmatpush3.bf16.msra.mxu0 %v2105_v63 }
 0x114   :  { %1665 = vmatprep.subr.bf16.mxu0 %v1846_v3 }
 0x116   :  { %v312_v32 = vpop.f32.mrb[2].mxu0 }
 0x117   :  { %v313_v33 = vadd.f32 %v2208_v29, %v312_v32  ;;  %v1228_v34 = vpop.f32.mrb[3].mxu0  ;;  %1667 = vmatpush3.bf16.msra.mxu0 %v2117_v2 }
 0x118   :  { %1668 = vmatprep.subr.bf16.mxu0 %v1846_v3 }
 0x119   :  { %v318_v35 = vadd.f32 %v317_v30, %v313_v33 }
 0x11b   :  { %1780 = vtanh.f32 %v318_v35  ;;  %1670 = vmatpush3.bf16.msra.mxu0 %v2129_v6 }
 0x11c   :  { %1671 = vmatprep.subr.bf16.mxu0 %v1846_v3 }
 0x11f   :  { %1673 = vmatpush3.bf16.msra.mxu0 %v2141_v10 }
 0x120   :  { %1674 = vmatprep.subr.bf16.mxu0 %v1846_v3 }
 0x123   :  { %1676 = vmatpush3.bf16.msra.mxu0 %v2153_v15 }
 0x124   :  { %1701 = vmatprep.subr.bf16.mxu0 %v1846_v3 }
 0x125   :  { %v1781_v36 = vpop.eup %1780 }
 0x126   :  { %1262 = vmatmul.mubr.f32.vlgmr.msra.gmra.mrb[2].mxu1 %v1781_v36  ;;  %v462_v38 = vsub.f32 %v2198_v27, %v1781_v36 }
 0x127   :  { %1631 = vmatpush3.bf16.msra.mxu1 %v1931_v8  ;;  %1331 = vmatprep.mubr.msk.f32.mxu1 %vm1847_vm0, %v1848_v11 }
 0x128   :  { %1632 = vmatprep.subr.bf16.mxu1 %v1846_v3  ;;  %v463_v41 = vmul.f32 0.5, %v462_v38 }
 0x12b   :  { %1634 = vmatpush3.bf16.msra.mxu1 %v1945_v13 }
 0x12c   :  { %1635 = vmatprep.subr.bf16.mxu1 %v1846_v3 }
 0x12f   :  { %1637 = vmatpush3.bf16.msra.mxu1 %v1962_v19 }
 0x130   :  { %1638 = vmatprep.subr.bf16.mxu1 %v1846_v3 }
 0x133   :  { %1640 = vmatpush3.bf16.msra.mxu1 %v1979_v25 }
 0x134   :  { %1641 = vmatprep.subr.bf16.mxu1 %v1846_v3 }
 0x137   :  { %1643 = vmatpush3.bf16.msra.mxu1 %v1996_v31 }
 0x138   :  { %1644 = vmatprep.subr.bf16.mxu1 %v1846_v3 }
 0x13b   :  { %1646 = vmatpush3.bf16.msra.mxu1 %v2013_v37 }
 0x13c   :  { %1647 = vmatprep.subr.bf16.mxu1 %v1846_v3 }
 0x13f   :  { %1649 = vmatpush3.bf16.msra.mxu1 %v2030_v43 }
 0x140   :  { %1650 = vmatprep.subr.bf16.mxu1 %v1846_v3 }
 0x143   :  { %1652 = vmatpush3.bf16.msra.mxu1 %v2047_v49 }
 0x144   :  { %1677 = vmatprep.subr.bf16.mxu1 %v1846_v3 }
 0x1d9   :  { %v458_v39 = vpop.f32.mrb[4].mxu0 }
 0x1da   :  { %v459_v40 = vadd.f32 %v2208_v29, %v458_v39  ;;  %v1298_v42 = vpop.f32.mrb[5].mxu0 }
 0x1dc   :  { %v464_v44 = vadd.f32 %v463_v41, %v459_v40 }
 0x1de   :  { %1782 = vtanh.f32 %v464_v44 }
 0x1e8   :  { %v1783_v45 = vpop.eup %1782 }
 0x1e9   :  { %1332 = vmatmul.mubr.f32.vlgmr.msra.gmra.mrb[4].mxu1 %v1783_v45  ;;  %v608_v56 = vsub.f32 %v2198_v27, %v1783_v45 }
 0x1ea   :  { %1679 = vmatpush3.bf16.msra.mxu1 %v1931_v8  ;;  %1401 = vmatprep.mubr.msk.f32.mxu1 %vm1847_vm0, %v1848_v11 }
 0x1eb   :  { %1680 = vmatprep.subr.bf16.mxu1 %v1846_v3  ;;  %v609_v59 = vmul.f32 0.5, %v608_v56 }
 0x1ee   :  { %1682 = vmatpush3.bf16.msra.mxu1 %v1945_v13 }
 0x1ef   :  { %1683 = vmatprep.subr.bf16.mxu1 %v1846_v3 }
 0x1f2   :  { %1685 = vmatpush3.bf16.msra.mxu1 %v1962_v19 }
 0x1f3   :  { %1686 = vmatprep.subr.bf16.mxu1 %v1846_v3 }
 0x1f6   :  { %1688 = vmatpush3.bf16.msra.mxu1 %v1979_v25 }
 0x1f7   :  { %1689 = vmatprep.subr.bf16.mxu1 %v1846_v3 }
 0x1f9   :  { %v387_v46 = vpop.f32.mrb[2].mxu1 }
 0x1fa   :  { %v391_v47 = vadd.f32 %v387_v46, %v2186_v20  ;;  %v1263_v48 = vpop.f32.mrb[3].mxu1  ;;  %1691 = vmatpush3.bf16.msra.mxu1 %v1996_v31 }
 0x1fb   :  { %1692 = vmatprep.subr.bf16.mxu1 %v1846_v3 }
 0x1fc   :  { %1784 = vtanh.f32 %v391_v47 }
 0x1fe   :  { %1694 = vmatpush3.bf16.msra.mxu1 %v2013_v37 }
 0x1ff   :  { %1695 = vmatprep.subr.bf16.mxu1 %v1846_v3 }
 0x202   :  { %1697 = vmatpush3.bf16.msra.mxu1 %v2030_v43 }
 0x203   :  { %1698 = vmatprep.subr.bf16.mxu1 %v1846_v3 }
 0x206   :  { %v1785_v50 = vpop.eup %1784  ;;  %1700 = vmatpush3.bf16.msra.mxu1 %v2047_v49 }
 0x207   :  { %1367 = vmatmul.mubr.f32.vlgmr.msra.gmra.mrb[6].mxu0 %v1785_v50  ;;  %1725 = vmatprep.subr.bf16.mxu1 %v1846_v3 }
 0x208   :  { %1703 = vmatpush3.bf16.msra.mxu0 %v2059_v53  ;;  %1436 = vmatprep.mubr.msk.f32.mxu0 %vm1847_vm0, %v1848_v11 }
 0x209   :  { %1704 = vmatprep.subr.bf16.mxu0 %v1846_v3 }
 0x20c   :  { %1706 = vmatpush3.bf16.msra.mxu0 %v2077_v57 }
 0x20d   :  { %1707 = vmatprep.subr.bf16.mxu0 %v1846_v3 }
 0x210   :  { %1709 = vmatpush3.bf16.msra.mxu0 %v2093_v60 }
 0x211   :  { %1710 = vmatprep.subr.bf16.mxu0 %v1846_v3 }
 0x214   :  { %1712 = vmatpush3.bf16.msra.mxu0 %v2105_v63 }
 0x215   :  { %1713 = vmatprep.subr.bf16.mxu0 %v1846_v3 }
 0x218   :  { %1715 = vmatpush3.bf16.msra.mxu0 %v2117_v2 }
 0x219   :  { %1716 = vmatprep.subr.bf16.mxu0 %v1846_v3 }
 0x21c   :  { %1718 = vmatpush3.bf16.msra.mxu0 %v2129_v6 }
 0x21d   :  { %1719 = vmatprep.subr.bf16.mxu0 %v1846_v3 }
 0x220   :  { %1721 = vmatpush3.bf16.msra.mxu0 %v2141_v10 }
 0x221   :  { %1722 = vmatprep.subr.bf16.mxu0 %v1846_v3 }
 0x224   :  { %1724 = vmatpush3.bf16.msra.mxu0 %v2153_v15 }
 0x225   :  { %1749 = vmatprep.subr.bf16.mxu0 %v1846_v3 }
 0x2bc   :  { %v533_v51 = vpop.f32.mrb[4].mxu1 }
 0x2bd   :  { %v537_v52 = vadd.f32 %v533_v51, %v2186_v20  ;;  %v1333_v54 = vpop.f32.mrb[5].mxu1 }
 0x2bf   :  { %1786 = vtanh.f32 %v537_v52 }
 0x2c9   :  { %v1787_v55 = vpop.eup %1786 }
 0x2ca   :  { %1437 = vmatmul.mubr.f32.vlgmr.msra.gmra.mrb[8].mxu0 %v1787_v55 }
 0x2cb   :  { %1751 = vmatpush3.bf16.msra.mxu0 %v2059_v53  ;;  %1506 = vmatprep.mubr.msk.f32.mxu0 %vm1847_vm0, %v1848_v11 }
 0x2cc   :  { %1752 = vmatprep.subr.bf16.mxu0 %v1846_v3 }
 0x2cf   :  { %1754 = vmatpush3.bf16.msra.mxu0 %v2077_v57 }
 0x2d0   :  { %1755 = vmatprep.subr.bf16.mxu0 %v1846_v3 }
 0x2d3   :  { %1757 = vmatpush3.bf16.msra.mxu0 %v2093_v60 }
 0x2d4   :  { %1758 = vmatprep.subr.bf16.mxu0 %v1846_v3 }
 0x2d7   :  { %1760 = vmatpush3.bf16.msra.mxu0 %v2105_v63 }
 0x2d8   :  { %1761 = vmatprep.subr.bf16.mxu0 %v1846_v3 }
 0x2da   :  { %v604_v53 = vpop.f32.mrb[6].mxu0 }
 0x2db   :  { %v605_v58 = vadd.f32 %v2208_v29, %v604_v53  ;;  %v1368_v61 = vpop.f32.mrb[7].mxu0  ;;  %1763 = vmatpush3.bf16.msra.mxu0 %v2117_v2 }
 0x2dc   :  { %1764 = vmatprep.subr.bf16.mxu0 %v1846_v3 }
 0x2dd   :  { %v610_v57 = vadd.f32 %v609_v59, %v605_v58 }
 0x2df   :  { %1788 = vtanh.f32 %v610_v57  ;;  %1766 = vmatpush3.bf16.msra.mxu0 %v2129_v6 }
 0x2e0   :  { %1767 = vmatprep.subr.bf16.mxu0 %v1846_v3 }
 0x2e3   :  { %1769 = vmatpush3.bf16.msra.mxu0 %v2141_v10 }
 0x2e4   :  { %1770 = vmatprep.subr.bf16.mxu0 %v1846_v3 }
 0x2e7   :  { %1772 = vmatpush3.bf16.msra.mxu0 %v2153_v15 }
 0x2e9   :  { %v1789_v60 = vpop.eup %1788 }
 0x2ea   :  { %1402 = vmatmul.mubr.f32.vlgmr.msra.gmra.mrb[6].mxu1 %v1789_v60 }
 0x2eb   :  { %1727 = vmatpush3.bf16.msra.mxu1 %v1931_v8  ;;  %1471 = vmatprep.mubr.msk.f32.mxu1 %vm1847_vm0, %v1848_v11  ;;  %v754_v8 = vsub.f32 %v2198_v27, %v1789_v60 }
 0x2ec   :  { %1728 = vmatprep.subr.bf16.mxu1 %v1846_v3 }
 0x2ef   :  { %1730 = vmatpush3.bf16.msra.mxu1 %v1945_v13 }
 0x2f0   :  { %1731 = vmatprep.subr.bf16.mxu1 %v1846_v3 }
 0x2f3   :  { %1733 = vmatpush3.bf16.msra.mxu1 %v1962_v19  ;;  %v755_v19 = vmul.f32 0.5, %v754_v8 }
 0x2f4   :  { %1734 = vmatprep.subr.bf16.mxu1 %v1846_v3 }
 0x2f7   :  { %1736 = vmatpush3.bf16.msra.mxu1 %v1979_v25 }
 0x2f8   :  { %1737 = vmatprep.subr.bf16.mxu1 %v1846_v3 }
 0x2fb   :  { %1739 = vmatpush3.bf16.msra.mxu1 %v1996_v31 }
 0x2fc   :  { %1740 = vmatprep.subr.bf16.mxu1 %v1846_v3 }
 0x2ff   :  { %1742 = vmatpush3.bf16.msra.mxu1 %v2013_v37 }
 0x300   :  { %1743 = vmatprep.subr.bf16.mxu1 %v1846_v3 }
 0x303   :  { %1745 = vmatpush3.bf16.msra.mxu1 %v2030_v43 }
 0x304   :  { %1746 = vmatprep.subr.bf16.mxu1 %v1846_v3 }
 0x307   :  { %1748 = vmatpush3.bf16.msra.mxu1 %v2047_v49 }
 0x39d   :  { %v750_v11 = vpop.f32.mrb[8].mxu0 }
 0x39e   :  { %v751_v13 = vadd.f32 %v2208_v29, %v750_v11  ;;  %v1438_v25 = vpop.f32.mrb[9].mxu0 }
 0x3a0   :  { %v756_v31 = vadd.f32 %v755_v19, %v751_v13 }
 0x3a2   :  { %1790 = vtanh.f32 %v756_v31 }
 0x3ac   :  { %v1791_v62 = vpop.eup %1790 }
 0x3ad   :  { %1472 = vmatmul.mubr.f32.vlgmr.msra.gmra.mrb[8].mxu1 %v1791_v62 }
 0x3bd   :  { %v679_v37 = vpop.f32.mrb[6].mxu1 }
 0x3be   :  { %v683_v63 = vadd.f32 %v679_v37, %v2186_v20  ;;  %v1403_v0 = vpop.f32.mrb[7].mxu1 }
 0x3c0   :  { %1792 = vtanh.f32 %v683_v63 }
 0x3ca   :  { %v1793_v43 = vpop.eup %1792 }
 0x3cb   :  { %1507 = vmatmul.mubr.f32.vlgmr.msra.gmra.mrb[10].mxu0 %v1793_v43 }
 0x480   :  { %v825_v3 = vpop.f32.mrb[8].mxu1 }
 0x481   :  { %v829_v49 = vadd.f32 %v825_v3, %v2186_v20  ;;  %v1473_v1 = vpop.f32.mrb[9].mxu1 }
 0x483   :  { %1794 = vtanh.f32 %v829_v49 }
 0x48d   :  { %v1795_v2 = vpop.eup %1794 }
 0x48e   :  { %905 = vst [vmem:[#allocation2] sm:$0xff] %v1795_v2 }
 0x48f   :  { %1809 = shalt.err (!%p1806_p4)
}
 0x490   :  { %s1810_s16 = scalar_lea.hbm %s2354_s10, 128 }
 0x491   :  { %p1811_p5 = scmp.ne.s32.totalorder %s2354_s10, %s1810_s16  ;;  %p1814_p6 = scmp.lt.u32.totalorder %s1810_s16, %s2354_s10 }
 0x493   :  { %p1816_p7 = pnand %p1814_p6, %p1811_p5 }
 0x495   :  { %1819 = shalt.err (!%p1816_p7)
}
 0x496   :  { %916 = dma.vmem_to_hbm [thread:$0]  %s914_s7, 128, %s2354_s10, [#allocation3]   ;;  %v900_v4 = vsub.f32 %v2198_v27, %v1791_v62 }
 0x497   :  { %s1850_s22 = smov [#allocation4]  }
 0x498   :  { %v901_v7 = vmul.f32 0.5, %v900_v4  ;;  %s923_s5 = sshll.u32 %s1850_s22, 4  ;;  %s924_s5 = int_to_ptr.vmem [resolvable:$true] %s923_s5 }
 0x499   :  { %s1820_s23 = scalar_lea.vmem %s924_s5, 128  ;;  %p1825_p9 = scmp.lt.s32.totalorder %s924_s5, %s924_s5 }
 0x49a   :  { %p1821_p8 = scmp.ne.s32.totalorder %s924_s5, %s1820_s23  ;;  %p1826_p10 = scmp.lt.s32.totalorder %s1820_s23, %s1820_s23 }
 0x49c   :  { %p1827_p11 = por %p1826_p10, %p1825_p9 }
 0x49e   :  { %v896_v5 = vpop.f32.mrb[10].mxu0  ;;  %p1828_p12 = pnand %p1827_p11, %p1821_p8 }
 0x49f   :  { %v897_v6 = vadd.f32 %v2208_v29, %v896_v5  ;;  %v1508_v9 = vpop.f32.mrb[11].mxu0 }
 0x4a1   :  { %v902_v10 = vadd.f32 %v901_v7, %v897_v6 }
 0x4a3   :  { %1796 = vtanh.f32 %v902_v10 }
 0x4ad   :  { %v1797_v12 = vpop.eup %1796 }
 0x4ae   :  { %906 = vst [vmem:[#allocation4] sm:$0xff] %v1797_v12 }
 0x4af   :  { %1831 = shalt.err (!%p1828_p12)
}
 0x4b0   :  { %s1832_s25 = scalar_lea.hbm %s2355_s11, 128 }
 0x4b1   :  { %p1833_p13 = scmp.ne.s32.totalorder %s2355_s11, %s1832_s25  ;;  %p1836_p0 = scmp.lt.u32.totalorder %s1832_s25, %s2355_s11 }
 0x4b3   :  { %p1838_p1 = pnand %p1836_p0, %p1833_p13 }
 0x4b5   :  { %1841 = shalt.err (!%p1838_p1)
}
 0x4b6   :  { %926 = dma.vmem_to_hbm [thread:$0]  %s924_s5, 128, %s2355_s11, [#allocation5]  }
 0x4b7   :  { %1842 = dma.done.wait [#allocation3], 128  }
 0x4b8   :  { %1843 = vsyncadd [#allocation3], 4294967168 }
 0x4b9   :  { %1844 = dma.done.wait [#allocation5], 128  }
 0x4ba   :  { %1845 = vsyncadd [#allocation5], 4294967168 }
 0x4bb   :  { %933 = vsyncpa [#allocation3], 1 }
 0x4bc   :  { %934 = vsyncpa [#allocation5], 1 }

</bundles_post_ra>
